<compile_context>
chip_gen: v5e
topology: v5e:2x2
jax: 0.10.0
libtpu: 0.0.40
codegen_flags: <defaults>
</compile_context>

<pallas_src>
import jax
import jax.numpy as jnp
import numpy as np
from jax.experimental import pallas as pl
from jax.experimental.pallas import tpu as pltpu


# ------------------------------------------------------------------
# Kernel 1: pointwise head, channels-on-sublane / pixels-on-lane.
#   x_ref:   [C4, T]   (pixels on lanes)
#   w1t_ref: [C, C4]   w2t_ref: [K, C]   b2_ref: [K, 1]
#   o_ref:   [K, T]
# ------------------------------------------------------------------
def head_kernel(x_ref, w1t_ref, w2t_ref, b2_ref, o_ref):
    h = jnp.dot(w1t_ref[...], x_ref[...], preferred_element_type=jnp.float32)
    h = jnp.maximum(h, 0.0)                       # ReLU (f32 on VPU)
    y = jnp.dot(w2t_ref[...], h, preferred_element_type=jnp.float32) + b2_ref[...]
    o_ref[...] = y.astype(o_ref.dtype)


def pointwise_head(x3, w1t, w2t_fold, b2_fold, *, pixel_tile=1024):
    """x3: [N, C4, HW] -> logits [N, K, HW] (no transposes anywhere)."""
    N, C4, HW = x3.shape
    C = w1t.shape[0]
    K = w2t_fold.shape[0]

    # Pixel tile: full HW if it fits, else a multiple of 128 (lane-dense blocks).
    # Large tiles amortize the ~0.35us/grid-step overhead; 1024*C4 f32 double-
    # buffered stays well under the v7x 32 MiB scoped VMEM limit for C4 <= 2048.
    if HW <= pixel_tile:
        T = HW
    else:
        T = max(128, (min(pixel_tile, HW) // 128) * 128)

    grid = (N, pl.cdiv(HW, T))   # ragged tail handled by Pallas boundary padding
    return pl.pallas_call(
        head_kernel,
        out_shape=jax.ShapeDtypeStruct((N, K, HW), jnp.float32),
        grid=grid,
        in_specs=[
            pl.BlockSpec((None, C4, T), lambda n, t: (n, 0, t)),
            pl.BlockSpec((C, C4), lambda n, t: (0, 0)),
            pl.BlockSpec((K, C), lambda n, t: (0, 0)),
            pl.BlockSpec((K, 1), lambda n, t: (0, 0)),
        ],
        out_specs=pl.BlockSpec((None, K, T), lambda n, t: (n, 0, t)),
        compiler_params=pltpu.CompilerParams(
            dimension_semantics=("parallel", "parallel")),
    )(x3, w1t, w2t_fold, b2_fold)


# ------------------------------------------------------------------
# Kernel 2: bilinear 4x upsample (align_corners=True), B maps per grid step.
#   uh_ref: [H4, H]   x_ref: [B, H, W]   uwt_ref: [W, W4]   o_ref: [B, H4, W4]
# ------------------------------------------------------------------
def upsample_kernel(uh_ref, x_ref, uwt_ref, o_ref):
    uh = uh_ref[...]
    uwt = uwt_ref[...]
    B = x_ref.shape[0]                      # static; small unrolled loop
    for b in range(B):
        xw = jnp.dot(x_ref[b], uwt, preferred_element_type=jnp.float32)     # [H, W4]
        o_ref[b] = jnp.dot(uh, xw, preferred_element_type=jnp.float32
                           ).astype(o_ref.dtype)                            # [H4, W4]


def bilinear_upsample_4x(maps, uh, uwt, *, batch=8):
    """maps: [NK, H, W] -> [NK, 4H, 4W]."""
    NK, H, W = maps.shape
    H4, W4 = uh.shape[0], uwt.shape[1]
    # Batch B maps per grid step, but keep >= 2 grid steps when possible so both
    # TensorCores of a dual-core chip (v7x) get work.
    B = max(1, min(batch, NK // 2)) if NK >= 2 else NK
    grid = (pl.cdiv(NK, B),)                # ragged tail handled by Pallas padding
    return pl.pallas_call(
        upsample_kernel,
        out_shape=jax.ShapeDtypeStruct((NK, H4, W4), jnp.float32),
        grid=grid,
        in_specs=[
            pl.BlockSpec((H4, H), lambda i: (0, 0)),
            pl.BlockSpec((B, H, W), lambda i: (i, 0, 0)),
            pl.BlockSpec((W, W4), lambda i: (0, 0)),
        ],
        out_specs=pl.BlockSpec((B, H4, W4), lambda i: (i, 0, 0)),
        compiler_params=pltpu.CompilerParams(dimension_semantics=("parallel",)),
    )(uh, maps, uwt)


# ------------------------------------------------------------------
# Glue: interpolation matrices, BN folding, forward pass
# ------------------------------------------------------------------
def bilinear_matrix(n_in, n_out):
    """Row-interpolation matrix matching nn.UpsamplingBilinear2d (align_corners=True)."""
    if n_out == 1:
        src = np.zeros((1,), np.float64)
    else:
        src = np.arange(n_out, dtype=np.float64) * (n_in - 1) / (n_out - 1)
    i0 = np.clip(np.floor(src).astype(np.int64), 0, n_in - 1)
    i1 = np.clip(i0 + 1, 0, n_in - 1)
    frac = src - i0
    m = np.zeros((n_out, n_in), np.float64)
    np.add.at(m, (np.arange(n_out), i0), 1.0 - frac)
    np.add.at(m, (np.arange(n_out), i1), frac)
    return jnp.asarray(m, jnp.float32)


def fold_params(w1, gamma, beta, run_mean, run_var, w2, b2, *, eps=1e-5):
    """Fold eval-mode BatchNorm into the second 1x1 conv (exact: BN is linear and
    sits between the ReLU and the linear `predict`).  Returns transposed weights
    for the channels-on-sublane kernel layout."""
    scale = gamma / jnp.sqrt(run_var + eps)          # [C]
    shift = beta - run_mean * scale                  # [C]
    w1t = w1.T                                       # [C, C4]
    w2t_fold = (w2 * scale[:, None]).T               # [K, C]   (row-scale of w2)
    b2_fold = (shift @ w2 + b2).reshape(-1, 1)       # [K, 1]
    return w1t, w2t_fold, b2_fold


def segmentation_head_forward(xs, folded_params, *, compute_dtype=jnp.float32,
                              pixel_tile=1024, upsample_batch=8):
    """xs: list of num_features NCHW tensors [N, C, H, W]. Returns [N, K, 4H, 4W].

    compute_dtype=jnp.bfloat16 halves HBM traffic of the memory-bound head (x/w1
    only; accumulation stays f32) -- recommended on v5e/v6e at real sizes."""
    w1t, w2t_fold, b2_fold = folded_params
    x = jnp.concatenate(xs, axis=1)                  # [N, 4C, H, W]
    N, C4, H, W = x.shape
    K = w2t_fold.shape[0]

    x3 = x.reshape(N, C4, H * W)                     # free reshape (NCHW contiguous)
    if compute_dtype != jnp.float32:
        x3 = x3.astype(compute_dtype)
        w1t = w1t.astype(compute_dtype)
    logits = pointwise_head(x3, w1t, w2t_fold, b2_fold,
                            pixel_tile=pixel_tile)   # [N, K, H*W]

    maps = logits.reshape(N * K, H, W)               # free reshape, no transpose
    uh = bilinear_matrix(H, 4 * H)                   # [4H, H]
    uwt = bilinear_matrix(W, 4 * W).T                # [W, 4W]
    up = bilinear_upsample_4x(maps, uh, uwt, batch=upsample_batch)  # [N*K, 4H, 4W]
    return up.reshape(N, K, 4 * H, 4 * W)            # NCHW output


def reference_forward(xs, raw_params):
    """Pure-JAX reference with the original (unfolded) module math."""
    w1, gamma, beta, run_mean, run_var, w2, b2, eps = raw_params
    x = jnp.concatenate(xs, axis=1)                  # [N, 4C, H, W]
    h = jnp.einsum('nchw,co->nohw', x, w1)
    h = jnp.maximum(h, 0.0)
    scale = gamma / jnp.sqrt(run_var + eps)
    shift = beta - run_mean * scale
    h = h * scale[None, :, None, None] + shift[None, :, None, None]
    y = jnp.einsum('nchw,co->nohw', h, w2) + b2[None, :, None, None]
    H, W = y.shape[2], y.shape[3]
    uh = bilinear_matrix(H, 4 * H)
    uw = bilinear_matrix(W, 4 * W)
    return jnp.einsum('Hh,nkhw,Ww->nkHW', uh, y, uw)


if __name__ == "__main__":
    # Small shapes: batch=2, channels=4, num_features=4, num_classes=3, spatial=16
    N, C, F, K, H, W = 2, 4, 4, 3, 16, 16
    eps = 1e-5

    key = jax.random.PRNGKey(0)
    keys = jax.random.split(key, 10)

    # Inputs: list of F NCHW feature maps
    xs = [jax.random.normal(keys[i], (N, C, H, W), jnp.float32) for i in range(F)]

    # dense1: Conv2d(C*F, C, 1, bias=False) weight [C, C*F, 1, 1] -> matmul [C*F, C]
    w1 = 0.1 * jax.random.normal(keys[4], (C * F, C), jnp.float32)
    # BatchNorm2d(C): affine + running stats (deterministic, nontrivial)
    gamma = 1.0 + 0.1 * jax.random.normal(keys[5], (C,), jnp.float32)
    beta = 0.1 * jax.random.normal(keys[6], (C,), jnp.float32)
    run_mean = 0.1 * jax.random.normal(keys[7], (C,), jnp.float32)
    run_var = 1.0 + 0.1 * jnp.abs(jax.random.normal(keys[8], (C,), jnp.float32))
    # predict: Conv2d(C, K, 1) weight [K, C, 1, 1] -> matmul [C, K], bias [K]
    w2 = 0.1 * jax.random.normal(keys[9], (C, K), jnp.float32)
    b2 = 0.05 * jnp.arange(K, dtype=jnp.float32)

    folded = fold_params(w1, gamma, beta, run_mean, run_var, w2, b2, eps=eps)

    out = segmentation_head_forward(xs, folded)
    out = jax.block_until_ready(out)
    assert out.shape == (N, K, 4 * H, 4 * W), out.shape

    ref = jax.block_until_ready(
        reference_forward(xs, (w1, gamma, beta, run_mean, run_var, w2, b2, eps)))
    np.testing.assert_allclose(np.asarray(out), np.asarray(ref), rtol=2e-5, atol=2e-5)

    print("KERNEL_OK")
</pallas_src>

<mosaic_0001>
module attributes {stable_mosaic.version = 11 : i64} {
  func.func @head_kernel(%arg0: i32, %arg1: i32, %arg2: memref<1x16x256xf32, #tpu.memory_space<vmem>>, %arg3: memref<4x16xf32, #tpu.memory_space<vmem>>, %arg4: memref<3x4xf32, #tpu.memory_space<vmem>>, %arg5: memref<3x1xf32, #tpu.memory_space<vmem>>, %arg6: memref<1x3x256xf32, #tpu.memory_space<vmem>>) attributes {dimension_semantics = [#tpu.dimension_semantics<parallel>, #tpu.dimension_semantics<parallel>], iteration_bounds = array<i64: 2, 1>, scalar_prefetch = 0 : i64, scratch_operands = 0 : i64, tpu.core_type = #tpu.core_type<tc>, window_params = [{transform_indices = @transform_0, window_bounds = array<i64: 1, 16, 256>}, {pipeline_mode = #tpu.pipeline_mode<synchronous>, transform_indices = @transform_1, window_bounds = array<i64: 4, 16>}, {pipeline_mode = #tpu.pipeline_mode<synchronous>, transform_indices = @transform_2, window_bounds = array<i64: 3, 4>}, {pipeline_mode = #tpu.pipeline_mode<synchronous>, transform_indices = @transform_3, window_bounds = array<i64: 3, 1>}, {transform_indices = @transform_4, window_bounds = array<i64: 1, 3, 256>}]} {
    %c0 = arith.constant 0 : index
    %c0_0 = arith.constant 0 : index
    %0 = vector.load %arg3[%c0, %c0_0] : memref<4x16xf32, #tpu.memory_space<vmem>>, vector<4x16xf32>
    %c0_1 = arith.constant 0 : index
    %c0_2 = arith.constant 0 : index
    %c0_3 = arith.constant 0 : index
    %1 = vector.load %arg2[%c0_1, %c0_2, %c0_3] : memref<1x16x256xf32, #tpu.memory_space<vmem>>, vector<1x16x256xf32>
    %2 = vector.shape_cast %1 : vector<1x16x256xf32> to vector<16x256xf32>
    %cst = arith.constant dense<0.000000e+00> : vector<4x256xf32>
    %3 = tpu.matmul %0, %2, %cst {dimension_numbers = #tpu.dot_dimension_numbers<[1], [0], [0], [1], [0, 0, 1, 1], [], []>} : vector<4x16xf32>, vector<16x256xf32>, vector<4x256xf32> -> vector<4x256xf32>
    %cst_4 = arith.constant 0.000000e+00 : f32
    %4 = vector.broadcast %cst_4 : f32 to vector<4x256xf32>
    %5 = arith.maximumf %3, %4 : vector<4x256xf32>
    %c0_5 = arith.constant 0 : index
    %c0_6 = arith.constant 0 : index
    %6 = vector.load %arg4[%c0_5, %c0_6] : memref<3x4xf32, #tpu.memory_space<vmem>>, vector<3x4xf32>
    %cst_7 = arith.constant dense<0.000000e+00> : vector<3x256xf32>
    %7 = tpu.matmul %6, %5, %cst_7 {dimension_numbers = #tpu.dot_dimension_numbers<[1], [0], [0], [1], [0, 0, 1, 1], [], []>} : vector<3x4xf32>, vector<4x256xf32>, vector<3x256xf32> -> vector<3x256xf32>
    %c0_8 = arith.constant 0 : index
    %c0_9 = arith.constant 0 : index
    %8 = vector.load %arg5[%c0_8, %c0_9] : memref<3x1xf32, #tpu.memory_space<vmem>>, vector<3x1xf32>
    %9 = vector.broadcast %8 : vector<3x1xf32> to vector<3x256xf32>
    %10 = arith.addf %7, %9 : vector<3x256xf32>
    %c0_10 = arith.constant 0 : index
    %c0_11 = arith.constant 0 : index
    %c0_12 = arith.constant 0 : index
    %11 = vector.load %arg6[%c0_10, %c0_11, %c0_12] : memref<1x3x256xf32, #tpu.memory_space<vmem>>, vector<1x3x256xf32>
    %12 = vector.shape_cast %11 : vector<1x3x256xf32> to vector<3x256xf32>
    %13 = vector.shape_cast %10 : vector<3x256xf32> to vector<1x3x256xf32>
    tpu.vector_store %arg6[%c0_10, %c0_11, %c0_12], %13 {strides = array<i32>} : memref<1x3x256xf32, #tpu.memory_space<vmem>>, vector<1x3x256xf32>,
    return
  }
  func.func @transform_0(%arg0: i32, %arg1: i32) -> (i32, i32, i32) {
    %c0_i32 = arith.constant 0 : i32
    %c0_i32_0 = arith.constant 0 : i32
    return %arg0, %c0_i32, %arg1 : i32, i32, i32
  }
  func.func @transform_1(%arg0: i32, %arg1: i32) -> (i32, i32) {
    %c0_i32 = arith.constant 0 : i32
    %c0_i32_0 = arith.constant 0 : i32
    %c0_i32_1 = arith.constant 0 : i32
    return %c0_i32, %c0_i32_0 : i32, i32
  }
  func.func @transform_2(%arg0: i32, %arg1: i32) -> (i32, i32) {
    %c0_i32 = arith.constant 0 : i32
    %c0_i32_0 = arith.constant 0 : i32
    %c0_i32_1 = arith.constant 0 : i32
    return %c0_i32, %c0_i32_0 : i32, i32
  }
  func.func @transform_3(%arg0: i32, %arg1: i32) -> (i32, i32) {
    %c0_i32 = arith.constant 0 : i32
    %c0_i32_0 = arith.constant 0 : i32
    %c0_i32_1 = arith.constant 0 : i32
    return %c0_i32, %c0_i32_0 : i32, i32
  }
  func.func @transform_4(%arg0: i32, %arg1: i32) -> (i32, i32, i32) {
    %c0_i32 = arith.constant 0 : i32
    %c0_i32_0 = arith.constant 0 : i32
    return %arg0, %c0_i32, %arg1 : i32, i32, i32
  }
}

</mosaic_0001>

<bundles_post_ra>
// kernel: tpu_custom_call.1
= control target key start
LH: loop header
LB: loop body
LE: loop exit
PB: predicated region body
PF: predicated region fallthrough
CT: control target
= control target key end

     0   :  { %9 = vsyncpa [#allocation3], 0  ;;  %s849_s0 = inlined_call_operand.hbm [shape: f32[2,16,256], index: 0, kind: input, shape index: {}]   ;;  %s850_s1 = inlined_call_operand.vmem [shape: f32[4,16], index: 1, kind: input, shape index: {}]   ;;  %s851_s2 = inlined_call_operand.hbm [shape: f32[3,4], index: 2, kind: input, shape index: {}]   ;;  %s852_s3 = inlined_call_operand.vmem [shape: f32[3,1], index: 3, kind: input, shape index: {}]   ;;  %s853_s4 = inlined_call_operand.vmem [shape: f32[2,3,256], index: 4, kind: output, shape index: {}]  }
   0x1   :  { %11 = vsyncpa [#allocation3 + $0x1], 0 }
   0x2   :  { %12 = vsyncpa [#allocation5], 0  ;;  %s721_s15 = smov 0   ;;  %s723_s16 = smov 0  }
   0x3   :  { %s725_s17 = smov 0   ;;  %s727_s18 = smov 0  }
   0x4   :  { %s729_s19 = smov 0   ;;  %s731_s20 = smov 0  }
   0x5 LB: > { %s483_s21 = sadd.s32 4294967295, %s690_s20   ;;  %s39_s22 = sadd.s32 1, %s678_s17  ;;  %s690_s20 = sphi %s731_s20, %s18_s20   ;;  %s686_s19 = sphi %s729_s19, %s863_s19   ;;  %s682_s18 = sphi %s727_s18, %s862_s18   ;;  %s678_s17 = sphi %s725_s17, %s861_s17   ;;  %s674_s16 = sphi %s723_s16, %s860_s16   ;;  %s670_s15 = sphi %s721_s15, %s859_s15  }
   0x6   : > { %p46_p0 = scmp.ne.s32.totalorder %s678_s17, %s674_s16  ;;  %p47_p1 = scmp.eq.s32.totalorder %s690_s20, 0 }
   0x7   : > { %p52_p2 = scmp.ne.s32.totalorder %s674_s16, %s670_s15  ;;  %p755_p3 = scmp.eq.s32.totalorder %s483_s21, 0 }
   0x8   : > { %p759_p4 = por %p47_p1, %p46_p0  ;;  %p485_p5 = scmp.ge.s32.totalorder %s690_s20, 1 }
   0x9   : > { %p766_p6 = por %p755_p3, %p52_p2  ;;  %p154_p7 = scmp.lt.s32.totalorder %s690_s20, 3 }
   0xa   : > { %s169_s28 = sshll.u32 %s851_s2, 4  ;;  %s692_s30 = smov [#allocation4]   ;;  %s170_s28 = int_to_ptr.hbm [resolvable:$true] %s169_s28 }
   0xb   : > { %p774_p8 = pnand %p485_p5, %p154_p7  ;;  %s171_s5 = sshll.u32 %s692_s30, 4  ;;  %s172_s5 = int_to_ptr.vmem [resolvable:$true] %s171_s5 }
   0xc   : > { %p521_p10 = scmp.lt.s32.totalorder %s690_s20, 2  ;;  %s30_s7 = sadd.s32 1, %s686_s19 }
   0xd   : > { %p512_p9 = pneg %p774_p8  ;;  %p32_p13 = scmp.ge.s32.totalorder %s30_s7, 2 }
   0xe   : > { %p785_p12 = pnand %p521_p10, %p759_p4  ;;  %s185_s8 = sand.u32 1, %s678_s17  }
   0xf   : > { %p513_p11 = pnand %p512_p9, %p755_p3  ;;  %s504_s9 = sshll.u32 %s686_s19, 5 }
  0x10   : > { %s865_s7 = smov (%p32_p13, %s30_s7), 0  ;;  %s488_s10 = sshll.u32 %s185_s8, 5 }
  0x11   : > { %515 = dma.hbm_to_vmem [thread:$0]  (!%p513_p11), %s170_s28, 64, %s172_s5, [#allocation5]  }
  0x12   : > { %s34_s11 = ssub.s32 %s686_s19, %s865_s7  ;;  %s196_s14 = scalar_lea.hbm %s849_s0, %s504_s9 }
  0x13   : > { %p37_p0 = scmp.eq.s32.totalorder %s34_s11, 0  ;;  %s197_s15 = sshll.u32 %s196_s14, 4  ;;  %s198_s15 = int_to_ptr.hbm [resolvable:$true] %s197_s15 }
  0x14   : > { %s189_s21 = scalar_lea.vmem [#allocation2], %s488_s10  ;;  %s186_s27 = scalar_lea.sflag [#allocation3], %s185_s8 }
  0x15   : > { %s199_s24 = sshll.u32 %s189_s21, 4  ;;  %s693_s28 = smov 256   ;;  %s200_s24 = int_to_ptr.vmem [resolvable:$true] %s199_s24 }
  0x16   : > { %s802_s26 = scalar_select %p37_p0, %s678_s17, %s39_s22  }
  0x17   : > { %s694_s30 = smov 16   ;;  %211 = sbr.rel (%p774_p8) target bundleno = 302 (0x12e), region = 36 }
  0x18   : > { %519 = dma.hbm_to_vmem [thread:$0]  (!%p785_p12), %s198_s15, 512, %s200_s24, %s186_s27, %s693_s28, %s693_s28, %s694_s30  }
  0x19   : > { %s213_s5 = sand.u32 (!%p774_p8), 1, %s674_s16  }
  0x1a   : > { %s492_s9 = sshll.u32 (!%p774_p8), %s213_s5, 5  ;;  %s214_s11 = scalar_lea.sflag (!%p774_p8), [#allocation3], %s213_s5 }
  0x1b   : > { %s217_s10 = scalar_lea.vmem (!%p774_p8), [#allocation2], %s492_s9 }
  0x1c   : > { %661 = dma.done.wait (%p766_p6), %s214_s11, 512  }
  0x1d   : > { %663 = vsyncadd (%p766_p6), %s214_s11, 4294966784 }
  0x1e   : > { %665 = dma.done.wait (%p755_p3), [#allocation5], 64  }
  0x1f   : > { %667 = vsyncadd (%p755_p3), [#allocation5], 4294967232  ;;  %v266_v0 = vld [vmem:[%s217_s10 + $0x10] sm:$0xff]  ;;  %v267_v1 = vld [vmem:[%s217_s10 + $0x18] sm:$0xff]  ;;  %vm268_vm0 = vcmask 130048   ;;  %v695_v6 = vmov 0  }
  0x20   : > { %v264_v2 = vld [vmem:[%s217_s10] sm:$0xff]  ;;  %286 = vmatpush.msra.mxu0 %v266_v0  ;;  %306 = vmatpush.msra.mxu1 %v267_v1  ;;  %v265_v3 = vld [vmem:[%s217_s10 + $0x8] sm:$0xff]  ;;  %vm325_vm1 = vcmask 1043456   ;;  %vm321_vm2 = vcmask 31744   ;;  %p254_p1 = scmp.lt.s32.totalorder %s682_s18, 1 }
  0x21   : > { %v263_v4 = vld [vmem:[%s850_s1] sm:$0xf]  ;;  %575 = vset.pattern.permute.xlu0 %v695_v6 }
  0x22   : > { %287 = vmatpush.msra.mxu0 %v264_v2  ;;  %307 = vmatpush.msra.mxu1 %v265_v3  ;;  %v315_v5 = vld [vmem:[%s852_s3] sm:$0x7]  ;;  %s867_s18 = smov (!%p254_p1, %s682_s18), 1 }
  0x23   : > { %496 = vmatmul.msk.f32.vlgmr.msra.gmra.mxu0 %vm268_vm0, %v263_v4  ;;  %497 = vmatmul.msk.f32.vlgmr.msra.gmra.mxu1 %vm268_vm0, %v263_v4  ;;  %v314_v11 = vld [vmem:[#allocation4] sm:$0x7]  ;;  %s505_s23 = sshll.u32 %s867_s18, 3 }
  0x24   : > { %318 = vperm.xlu0 %575, %v315_v5   ;;  %s261_s13 = scalar_lea.vmem %s853_s4, %s505_s23 }
  0x96   : > { %v319_v12 = vpop.permute.xlu0 %318 }
  0xa0   : > { %v289_v7 = vpop.f32.mrf.mxu0  ;;  %v309_v8 = vpop.f32.mrf.mxu1 }
  0xa1   : > { %v312_v9 = vmax.f32 %v289_v7, 0.0  ;;  %v313_v10 = vmax.f32 %v309_v8, 0.0 }
  0xa3   : > { %498 = vmatpush.msk.msra.mxu2 %vm325_vm1, %v312_v9  ;;  %500 = vmatpush.msk.msra.mxu3 %vm325_vm1, %v313_v10 }
  0xa4   : > { %499 = vmatmul.msk.f32.vlgmr.msra.gmra.mxu2 %vm321_vm2, %v314_v11  ;;  %501 = vmatmul.msk.f32.vlgmr.msra.gmra.mxu3 %vm321_vm2, %v314_v11 }
 0x127   : > { %v349_v13 = vpop.f32.mrf.mxu2  ;;  %v369_v14 = vpop.f32.mrf.mxu3 }
 0x128   : > { %v370_v15 = vadd.f32 %v369_v14, %v319_v12  ;;  %v350_v16 = vadd.f32 %v349_v13, %v319_v12 }
 0x12a   : > { %v374_v17 = vrot.slane %v370_v15, 4 }
 0x12c   : > { %v375_v18 = vsel %vm325_vm1, %v350_v16, %v374_v17 }
 0x12d   : > { %377 = vst [vmem:[%s261_s13] sm:$0x77] %v375_v18 }
 0x12e PF: > { %s18_s20 = sadd.s32 1, %s690_s20   ;;  %s859_s15 = smov %s674_s16 }
 0x12f   : > { %p15_p2 = scmp.ge.s32.totalorder %s18_s20, 4   ;;  %s860_s16 = smov %s678_s17 }
 0x130   : > { %s861_s17 = smov %s802_s26  ;;  %s862_s18 = smov %s686_s19 }
 0x131   : > { %s863_s19 = smov %s865_s7  ;;  %17 = sbr.rel (!%p15_p2) target bundleno = 5 (0x5), region = 80 }
 0x136   :  { %408 = vsyncpa [#allocation3], 1 }
 0x137   :  { %410 = vsyncpa [#allocation3 + $0x1], 1 }
 0x138   :  { %411 = vsyncpa [#allocation5], 1 }

</bundles_post_ra>
